<compile_context>
chip_gen: v5e
topology: v5e:2x2
jax: 0.10.0
libtpu: 0.0.40
codegen_flags: <defaults>
</compile_context>

<pallas_src>
import functools

import jax
import jax.numpy as jnp
from jax.experimental import pallas as pl
from jax.experimental.pallas import tpu as pltpu


def _round_up(n, m):
    return ((n + m - 1) // m) * m


def _cdiv(a, b):
    return -(-a // b)


def _pad_axis(a, axis, new_size):
    pad = new_size - a.shape[axis]
    if pad == 0:
        return a
    widths = [(0, 0)] * a.ndim
    widths[axis] = (0, pad)
    return jnp.pad(a, widths)


def _device_info():
    """(num_tensorcores, default_scoped_vmem_bytes, vmem_capacity_bytes).

    Decided once at import; conservative fallbacks if the query fails."""
    num_tc, default_vmem, capacity = 1, 32 << 20, 64 << 20
    try:
        kind = (jax.devices()[0].device_kind or "").lower()
    except Exception:  # no devices visible at import time
        kind = ""
    if ("v5e" in kind) or ("v5" in kind and "lite" in kind):
        default_vmem = 16 << 20          # v5e default scoped VMEM
    if "v7" in kind or "7x" in kind:
        num_tc = 2                       # v7x: 2 TensorCores / chip
    try:
        capacity = int(pltpu.get_tpu_info().vmem_capacity_bytes)
    except Exception:
        capacity = 64 << 20              # conservative (v7x per-TC) fallback
    return num_tc, default_vmem, capacity


_NUM_TC, _DEFAULT_SCOPED_VMEM, _VMEM_CAPACITY = _device_info()


def _choose_tiling(B, num_tc, max_tile=512):
    """Pick tile_b first (multiple of 16, <= max_tile rows), then the padded
    batch.  1-TC chips: one tile when the batch fits (a multi-step grid is a
    serial loop with ~600 cycles/step of pure overhead).  2-TC chips: an even
    number of grid steps so the 'parallel' axis splits across both cores."""
    if num_tc > 1 and B > 32:
        steps = max(2, 2 * _cdiv(B, 2 * max_tile))      # even step count
        tile = min(_round_up(_cdiv(B, steps), 16), max_tile)
        b_pad = steps * tile
    else:
        tile = min(_round_up(B, 16), max_tile)
        b_pad = _round_up(B, tile)
    return tile, b_pad


def _mlsh_kernel(*refs, num_layers, compute_dtype):
    """One batch tile, fully resident in VMEM.

    refs (num_layers > 1):
      x (TB, Dp) in-dtype | w0 (Dp, Hp) cd | b0 (1, Hp) f32 |
      wl (L-1, Hp, Hp) cd | bl (L-1, 1, Hp) f32 |
      hwf (L*Hp, Op) cd | hb_sum (1, Op) f32 | out (TB, Op)
    """
    if num_layers > 1:
        (x_ref, w0_ref, b0_ref, wl_ref, bl_ref,
         hwf_ref, hbs_ref, out_ref) = refs
    else:
        x_ref, w0_ref, b0_ref, hwf_ref, hbs_ref, out_ref = refs
        wl_ref = bl_ref = None

    cd = compute_dtype
    h_p = hwf_ref.shape[0] // num_layers    # padded hidden dim (static)

    # Layer 0: relu(x @ W0 + b0).  x is cast to the MXU dtype in-register
    # (f32 in HBM -> only 4 B/elem of x traffic); accumulation is f32.
    h = jnp.dot(x_ref[...].astype(cd), w0_ref[...],
                preferred_element_type=jnp.float32)
    h = jnp.maximum(h + b0_ref[...], 0.0).astype(cd)

    # Head GEMMs interleaved with the layer GEMMs against row-blocks of the
    # fused head-weight slab: no concat copy, one live hidden activation.
    acc = jnp.dot(h, hwf_ref[pl.ds(0, h_p), :],
                  preferred_element_type=jnp.float32)
    for l in range(num_layers - 1):          # static unroll; small L
        h = jnp.dot(h, wl_ref[l], preferred_element_type=jnp.float32)
        h = jnp.maximum(h + bl_ref[l], 0.0).astype(cd)   # bl_ref[l]: (1, Hp)
        acc = acc + jnp.dot(h, hwf_ref[pl.ds((l + 1) * h_p, h_p), :],
                            preferred_element_type=jnp.float32)

    out_ref[...] = (acc + hbs_ref[...]).astype(out_ref.dtype)


def prepare_params(params, compute_dtype=jnp.bfloat16):
    """One-time packing: pad feature dims to multiples of 128 (lane-dense MXU
    operands / stores), cast matmul weights to the MXU dtype, fuse the L head
    weight matrices into one (L*H_p, O_p) slab, and pre-sum the head biases.

    params: w0 (D,H), b0 (1,H) or (H,), wl (L-1,H,H), bl (L-1,H),
            hw (L,H,O), hb (L,O).  Weights stored (in_features, out_features)
            so the kernel computes x @ W + b."""
    w0, b0 = params["w0"], params["b0"]
    hw, hb = params["hw"], params["hb"]
    D, H = w0.shape
    L, _, O = hw.shape
    D_p, H_p, O_p = _round_up(D, 128), _round_up(H, 128), _round_up(O, 128)
    f32 = jnp.float32

    packed = {
        "w0": _pad_axis(_pad_axis(w0, 0, D_p), 1, H_p).astype(compute_dtype),
        "b0": _pad_axis(b0.reshape(1, H), 1, H_p).astype(f32),
        # Fused head weights (L*H_p, O_p); row block l holds Hw_l.
        "hwf": _pad_axis(_pad_axis(hw, 1, H_p), 2, O_p)
               .reshape(L * H_p, O_p).astype(compute_dtype),
        # Head biases summed once here, added once in the kernel.
        "hb_sum": _pad_axis(hb.sum(axis=0, keepdims=True).astype(f32), 1, O_p),
    }
    if L > 1:
        wl, bl = params["wl"], params["bl"]
        packed["wl"] = _pad_axis(_pad_axis(wl, 1, H_p), 2, H_p
                                 ).astype(compute_dtype)
        # Biases pre-shaped (L-1, 1, Hp): kernel slices a broadcast-ready row.
        packed["bl"] = _pad_axis(bl.reshape(L - 1, 1, H), 2, H_p).astype(f32)

    meta = dict(D=D, H=H, O=O, L=L, D_p=D_p, H_p=H_p, O_p=O_p,
                compute_dtype=compute_dtype)
    return packed, meta


def multilayer_sum_head(x, packed, meta, *, tile_b=None):
    """Jittable forward.  `packed`/`meta` come from prepare_params; only x is
    padded per call (cheap, fuses under jit)."""
    L = meta["L"]
    D_p, H_p, O_p = meta["D_p"], meta["H_p"], meta["O_p"]
    cd = meta["compute_dtype"]
    B, _ = x.shape

    if tile_b is None:
        tile_b, B_p = _choose_tiling(B, _NUM_TC)
    else:
        assert tile_b % 8 == 0, "tile_b must be a multiple of 8"
        B_p = _round_up(B, tile_b)

    x_p = _pad_axis(_pad_axis(x, 1, D_p), 0, B_p)   # keep input dtype

    grid = (B_p // tile_b,)
    kernel = functools.partial(_mlsh_kernel, num_layers=L, compute_dtype=cd)

    def const_spec(shape):
        nd = len(shape)
        return pl.BlockSpec(shape, lambda i: (0,) * nd)

    in_specs = [pl.BlockSpec((tile_b, D_p), lambda i: (i, 0)),
                const_spec(packed["w0"].shape), const_spec(packed["b0"].shape)]
    args = [x_p, packed["w0"], packed["b0"]]
    if L > 1:
        in_specs += [const_spec(packed["wl"].shape),
                     const_spec(packed["bl"].shape)]
        args += [packed["wl"], packed["bl"]]
    in_specs += [const_spec(packed["hwf"].shape),
                 const_spec(packed["hb_sum"].shape)]
    args += [packed["hwf"], packed["hb_sum"]]
    out_spec = pl.BlockSpec((tile_b, O_p), lambda i: (i, 0))

    # Resident-VMEM estimate (weights double-buffered by the pipeline, I/O
    # tiles double-buffered, live activations/accumulator in f32).
    x_bytes = jnp.dtype(x.dtype).itemsize
    w_bytes = sum(int(v.size) * v.dtype.itemsize for v in packed.values())
    io_bytes = 2 * tile_b * (D_p + O_p) * x_bytes
    act_bytes = tile_b * (2 * H_p + O_p) * 4
    vmem_need = 2 * w_bytes + io_bytes + act_bytes

    cp_kwargs = {"dimension_semantics": ("parallel",)}
    if vmem_need > int(0.75 * _DEFAULT_SCOPED_VMEM):
        cp_kwargs["vmem_limit_bytes"] = int(
            min(max(vmem_need * 1.25, _DEFAULT_SCOPED_VMEM),
                0.85 * _VMEM_CAPACITY))

    flops = 2 * B_p * (D_p * H_p + (L - 1) * H_p * H_p + L * H_p * O_p)
    cost = pl.CostEstimate(
        flops=flops, transcendentals=0,
        bytes_accessed=B_p * D_p * x_bytes + w_bytes + B_p * O_p * x_bytes)

    out_p = pl.pallas_call(
        kernel,
        out_shape=jax.ShapeDtypeStruct((B_p, O_p), x.dtype),
        grid_spec=pltpu.PrefetchScalarGridSpec(
            num_scalar_prefetch=0,
            grid=grid,
            in_specs=in_specs,
            out_specs=out_spec),
        compiler_params=pltpu.CompilerParams(**cp_kwargs),
        cost_estimate=cost,
    )(*args)

    return out_p[:B, :meta["O"]]


def init_params(key, input_dim, hidden_dim, num_layers, output_dim,
                dtype=jnp.float32):
    """Deterministic synthetic parameters, nn.Linear-consistent but stored
    transposed: (in_features, out_features)."""
    ks = jax.random.split(key, 6)
    w0 = jax.random.normal(ks[0], (input_dim, hidden_dim), dtype) * 0.1
    b0 = jax.random.normal(ks[1], (1, hidden_dim), dtype) * 0.1
    wl = jax.random.normal(
        ks[2], (max(num_layers - 1, 1), hidden_dim, hidden_dim), dtype) * 0.1
    bl = jax.random.normal(
        ks[3], (max(num_layers - 1, 1), hidden_dim), dtype) * 0.1
    hw = jax.random.normal(ks[4], (num_layers, hidden_dim, output_dim),
                           dtype) * 0.1
    hb = jax.random.normal(ks[5], (num_layers, output_dim), dtype) * 0.1
    return dict(w0=w0, b0=b0, wl=wl, bl=bl, hw=hw, hb=hb)


def reference_forward(x, params, num_layers, compute_dtype=jnp.float32):
    """Pure-JAX mirror of the PyTorch module.  With compute_dtype=bf16 it also
    mirrors the kernel's numerics (bf16 MXU inputs, f32 accumulation)."""
    cd, f32 = compute_dtype, jnp.float32
    h = jnp.dot(x.astype(cd), params["w0"].astype(cd),
                preferred_element_type=f32) + params["b0"].astype(f32)
    h = jnp.maximum(h, 0.0)
    out = jnp.dot(h.astype(cd), params["hw"][0].astype(cd),
                  preferred_element_type=f32) + params["hb"][0].astype(f32)
    for l in range(num_layers - 1):
        h = jnp.dot(h.astype(cd), params["wl"][l].astype(cd),
                    preferred_element_type=f32) + params["bl"][l].astype(f32)
        h = jnp.maximum(h, 0.0)
        out = (out
               + jnp.dot(h.astype(cd), params["hw"][l + 1].astype(cd),
                         preferred_element_type=f32)
               + params["hb"][l + 1].astype(f32))
    return out.astype(x.dtype)


if __name__ == "__main__":
    batch = 16
    input_dim = 32
    hidden_dim = 32
    num_layers = 3
    output_dim = 8

    key = jax.random.PRNGKey(0)
    kx, kp = jax.random.split(key)
    x = jax.random.normal(kx, (batch, input_dim), jnp.float32)
    params = init_params(kp, input_dim, hidden_dim, num_layers, output_dim)

    # Pack weights once; the per-call forward is jitted and asynchronous.
    packed, meta = prepare_params(params, compute_dtype=jnp.bfloat16)
    fwd = jax.jit(lambda xx, pp: multilayer_sum_head(xx, pp, meta))

    out = jax.block_until_ready(fwd(x, packed))

    ref_cd = reference_forward(x, params, num_layers,
                               compute_dtype=jnp.bfloat16)
    ref_f32 = reference_forward(x, params, num_layers,
                                compute_dtype=jnp.float32)

    assert out.shape == (batch, output_dim), out.shape
    err_cd = float(jnp.max(jnp.abs(out - ref_cd)))
    assert jnp.allclose(out, ref_cd, atol=2e-3, rtol=2e-3), (
        f"max abs err vs bf16-mirror reference: {err_cd}")
    assert jnp.allclose(out, ref_f32, atol=5e-2, rtol=5e-2), (
        "kernel drifted from the f32 reference beyond bf16 tolerance")

    print("KERNEL_OK")
</pallas_src>

<mosaic_0001>
module attributes {stable_mosaic.version = 11 : i64} {
  func.func @_mlsh_kernel(%arg0: i32, %arg1: memref<16x128xf32, #tpu.memory_space<vmem>>, %arg2: memref<128x128xbf16, #tpu.memory_space<vmem>>, %arg3: memref<1x128xf32, #tpu.memory_space<vmem>>, %arg4: memref<2x128x128xbf16, #tpu.memory_space<vmem>>, %arg5: memref<2x1x128xf32, #tpu.memory_space<vmem>>, %arg6: memref<384x128xbf16, #tpu.memory_space<vmem>>, %arg7: memref<1x128xf32, #tpu.memory_space<vmem>>, %arg8: memref<16x128xf32, #tpu.memory_space<vmem>>) attributes {dimension_semantics = [#tpu.dimension_semantics<parallel>], iteration_bounds = array<i64: 1>, scalar_prefetch = 0 : i64, scratch_operands = 0 : i64, tpu.core_type = #tpu.core_type<tc>, window_params = [{transform_indices = @transform_0, window_bounds = array<i64: 16, 128>}, {pipeline_mode = #tpu.pipeline_mode<synchronous>, transform_indices = @transform_1, window_bounds = array<i64: 128, 128>}, {pipeline_mode = #tpu.pipeline_mode<synchronous>, transform_indices = @transform_2, window_bounds = array<i64: 1, 128>}, {pipeline_mode = #tpu.pipeline_mode<synchronous>, transform_indices = @transform_3, window_bounds = array<i64: 2, 128, 128>}, {pipeline_mode = #tpu.pipeline_mode<synchronous>, transform_indices = @transform_4, window_bounds = array<i64: 2, 1, 128>}, {pipeline_mode = #tpu.pipeline_mode<synchronous>, transform_indices = @transform_5, window_bounds = array<i64: 384, 128>}, {pipeline_mode = #tpu.pipeline_mode<synchronous>, transform_indices = @transform_6, window_bounds = array<i64: 1, 128>}, {transform_indices = @transform_7, window_bounds = array<i64: 16, 128>}]} {
    %c0 = arith.constant 0 : index
    %c0_0 = arith.constant 0 : index
    %0 = vector.load %arg1[%c0, %c0_0] : memref<16x128xf32, #tpu.memory_space<vmem>>, vector<16x128xf32>
    %1 = arith.truncf %0 : vector<16x128xf32> to vector<16x128xbf16>
    %c0_1 = arith.constant 0 : index
    %c0_2 = arith.constant 0 : index
    %2 = vector.load %arg2[%c0_1, %c0_2] : memref<128x128xbf16, #tpu.memory_space<vmem>>, vector<128x128xbf16>
    %cst = arith.constant dense<0.000000e+00> : vector<16x128xf32>
    %3 = tpu.matmul %1, %2, %cst {dimension_numbers = #tpu.dot_dimension_numbers<[1], [0], [0], [1], [0, 0, 1, 1], [], []>} : vector<16x128xbf16>, vector<128x128xbf16>, vector<16x128xf32> -> vector<16x128xf32>
    %c0_3 = arith.constant 0 : index
    %c0_4 = arith.constant 0 : index
    %4 = vector.load %arg3[%c0_3, %c0_4] : memref<1x128xf32, #tpu.memory_space<vmem>>, vector<1x128xf32>
    %5 = vector.broadcast %4 : vector<1x128xf32> to vector<16x128xf32>
    %6 = arith.addf %3, %5 : vector<16x128xf32>
    %cst_5 = arith.constant 0.000000e+00 : f32
    %7 = vector.broadcast %cst_5 : f32 to vector<16x128xf32>
    %8 = arith.maximumf %6, %7 : vector<16x128xf32>
    %9 = arith.truncf %8 : vector<16x128xf32> to vector<16x128xbf16>
    %c0_6 = arith.constant 0 : index
    %c0_7 = arith.constant 0 : index
    %10 = vector.load %arg6[%c0_6, %c0_7] : memref<384x128xbf16, #tpu.memory_space<vmem>>, vector<128x128xbf16>
    %cst_8 = arith.constant dense<0.000000e+00> : vector<16x128xf32>
    %11 = tpu.matmul %9, %10, %cst_8 {dimension_numbers = #tpu.dot_dimension_numbers<[1], [0], [0], [1], [0, 0, 1, 1], [], []>} : vector<16x128xbf16>, vector<128x128xbf16>, vector<16x128xf32> -> vector<16x128xf32>
    %c0_9 = arith.constant 0 : index
    %c0_10 = arith.constant 0 : index
    %c0_11 = arith.constant 0 : index
    %12 = vector.load %arg4[%c0_9, %c0_10, %c0_11] : memref<2x128x128xbf16, #tpu.memory_space<vmem>>, vector<1x128x128xbf16>
    %13 = vector.shape_cast %12 : vector<1x128x128xbf16> to vector<128x128xbf16>
    %cst_12 = arith.constant dense<0.000000e+00> : vector<16x128xf32>
    %14 = tpu.matmul %9, %13, %cst_12 {dimension_numbers = #tpu.dot_dimension_numbers<[1], [0], [0], [1], [0, 0, 1, 1], [], []>} : vector<16x128xbf16>, vector<128x128xbf16>, vector<16x128xf32> -> vector<16x128xf32>
    %c0_13 = arith.constant 0 : index
    %c0_14 = arith.constant 0 : index
    %c0_15 = arith.constant 0 : index
    %15 = vector.load %arg5[%c0_13, %c0_14, %c0_15] : memref<2x1x128xf32, #tpu.memory_space<vmem>>, vector<1x1x128xf32>
    %16 = vector.shape_cast %15 : vector<1x1x128xf32> to vector<1x128xf32>
    %17 = vector.broadcast %16 : vector<1x128xf32> to vector<16x128xf32>
    %18 = arith.addf %14, %17 : vector<16x128xf32>
    %cst_16 = arith.constant 0.000000e+00 : f32
    %19 = vector.broadcast %cst_16 : f32 to vector<16x128xf32>
    %20 = arith.maximumf %18, %19 : vector<16x128xf32>
    %21 = arith.truncf %20 : vector<16x128xf32> to vector<16x128xbf16>
    %c128 = arith.constant 128 : index
    %c0_17 = arith.constant 0 : index
    %22 = vector.load %arg6[%c128, %c0_17] : memref<384x128xbf16, #tpu.memory_space<vmem>>, vector<128x128xbf16>
    %cst_18 = arith.constant dense<0.000000e+00> : vector<16x128xf32>
    %23 = tpu.matmul %21, %22, %cst_18 {dimension_numbers = #tpu.dot_dimension_numbers<[1], [0], [0], [1], [0, 0, 1, 1], [], []>} : vector<16x128xbf16>, vector<128x128xbf16>, vector<16x128xf32> -> vector<16x128xf32>
    %24 = arith.addf %11, %23 : vector<16x128xf32>
    %c1 = arith.constant 1 : index
    %c0_19 = arith.constant 0 : index
    %c0_20 = arith.constant 0 : index
    %25 = vector.load %arg4[%c1, %c0_19, %c0_20] : memref<2x128x128xbf16, #tpu.memory_space<vmem>>, vector<1x128x128xbf16>
    %26 = vector.shape_cast %25 : vector<1x128x128xbf16> to vector<128x128xbf16>
    %cst_21 = arith.constant dense<0.000000e+00> : vector<16x128xf32>
    %27 = tpu.matmul %21, %26, %cst_21 {dimension_numbers = #tpu.dot_dimension_numbers<[1], [0], [0], [1], [0, 0, 1, 1], [], []>} : vector<16x128xbf16>, vector<128x128xbf16>, vector<16x128xf32> -> vector<16x128xf32>
    %c1_22 = arith.constant 1 : index
    %c0_23 = arith.constant 0 : index
    %c0_24 = arith.constant 0 : index
    %28 = vector.load %arg5[%c1_22, %c0_23, %c0_24] : memref<2x1x128xf32, #tpu.memory_space<vmem>>, vector<1x1x128xf32>
    %29 = vector.shape_cast %28 : vector<1x1x128xf32> to vector<1x128xf32>
    %30 = vector.broadcast %29 : vector<1x128xf32> to vector<16x128xf32>
    %31 = arith.addf %27, %30 : vector<16x128xf32>
    %cst_25 = arith.constant 0.000000e+00 : f32
    %32 = vector.broadcast %cst_25 : f32 to vector<16x128xf32>
    %33 = arith.maximumf %31, %32 : vector<16x128xf32>
    %34 = arith.truncf %33 : vector<16x128xf32> to vector<16x128xbf16>
    %c256 = arith.constant 256 : index
    %c0_26 = arith.constant 0 : index
    %35 = vector.load %arg6[%c256, %c0_26] : memref<384x128xbf16, #tpu.memory_space<vmem>>, vector<128x128xbf16>
    %cst_27 = arith.constant dense<0.000000e+00> : vector<16x128xf32>
    %36 = tpu.matmul %34, %35, %cst_27 {dimension_numbers = #tpu.dot_dimension_numbers<[1], [0], [0], [1], [0, 0, 1, 1], [], []>} : vector<16x128xbf16>, vector<128x128xbf16>, vector<16x128xf32> -> vector<16x128xf32>
    %37 = arith.addf %24, %36 : vector<16x128xf32>
    %c0_28 = arith.constant 0 : index
    %c0_29 = arith.constant 0 : index
    %38 = vector.load %arg7[%c0_28, %c0_29] : memref<1x128xf32, #tpu.memory_space<vmem>>, vector<1x128xf32>
    %39 = vector.broadcast %38 : vector<1x128xf32> to vector<16x128xf32>
    %40 = arith.addf %37, %39 : vector<16x128xf32>
    %c0_30 = arith.constant 0 : index
    %c0_31 = arith.constant 0 : index
    %41 = vector.load %arg8[%c0_30, %c0_31] : memref<16x128xf32, #tpu.memory_space<vmem>>, vector<16x128xf32>
    tpu.vector_store %arg8[%c0_30, %c0_31], %40 {strides = array<i32>} : memref<16x128xf32, #tpu.memory_space<vmem>>, vector<16x128xf32>,
    return
  }
  func.func @transform_0(%arg0: i32) -> (i32, i32) {
    %c0_i32 = arith.constant 0 : i32
    %c0_i32_0 = arith.constant 0 : i32
    return %arg0, %c0_i32 : i32, i32
  }
  func.func @transform_1(%arg0: i32) -> (i32, i32) {
    %c0_i32 = arith.constant 0 : i32
    %c0_i32_0 = arith.constant 0 : i32
    %c0_i32_1 = arith.constant 0 : i32
    return %c0_i32, %c0_i32_0 : i32, i32
  }
  func.func @transform_2(%arg0: i32) -> (i32, i32) {
    %c0_i32 = arith.constant 0 : i32
    %c0_i32_0 = arith.constant 0 : i32
    %c0_i32_1 = arith.constant 0 : i32
    return %c0_i32, %c0_i32_0 : i32, i32
  }
  func.func @transform_3(%arg0: i32) -> (i32, i32, i32) {
    %c0_i32 = arith.constant 0 : i32
    %c0_i32_0 = arith.constant 0 : i32
    %c0_i32_1 = arith.constant 0 : i32
    %c0_i32_2 = arith.constant 0 : i32
    return %c0_i32, %c0_i32_0, %c0_i32_1 : i32, i32, i32
  }
  func.func @transform_4(%arg0: i32) -> (i32, i32, i32) {
    %c0_i32 = arith.constant 0 : i32
    %c0_i32_0 = arith.constant 0 : i32
    %c0_i32_1 = arith.constant 0 : i32
    %c0_i32_2 = arith.constant 0 : i32
    return %c0_i32, %c0_i32_0, %c0_i32_1 : i32, i32, i32
  }
  func.func @transform_5(%arg0: i32) -> (i32, i32) {
    %c0_i32 = arith.constant 0 : i32
    %c0_i32_0 = arith.constant 0 : i32
    %c0_i32_1 = arith.constant 0 : i32
    return %c0_i32, %c0_i32_0 : i32, i32
  }
  func.func @transform_6(%arg0: i32) -> (i32, i32) {
    %c0_i32 = arith.constant 0 : i32
    %c0_i32_0 = arith.constant 0 : i32
    %c0_i32_1 = arith.constant 0 : i32
    return %c0_i32, %c0_i32_0 : i32, i32
  }
  func.func @transform_7(%arg0: i32) -> (i32, i32) {
    %c0_i32 = arith.constant 0 : i32
    %c0_i32_0 = arith.constant 0 : i32
    return %arg0, %c0_i32 : i32, i32
  }
}

</mosaic_0001>

<bundles_post_ra>
// kernel: _lambda_.1
= control target key start
LH: loop header
LB: loop body
LE: loop exit
PB: predicated region body
PF: predicated region fallthrough
CT: control target
= control target key end

     0   :  { %12 = vsyncpa [#allocation3], 0  ;;  %s987_s0 = inlined_call_operand.vmem [shape: f32[16,128], index: 0, kind: input, shape index: {}]   ;;  %s988_s1 = inlined_call_operand.hbm [shape: bf16[128,128], index: 1, kind: input, shape index: {}]   ;;  %s989_s2 = inlined_call_operand.vmem [shape: f32[1,128], index: 2, kind: input, shape index: {}]   ;;  %s990_s3 = inlined_call_operand.hbm [shape: bf16[2,128,128], index: 3, kind: input, shape index: {}]   ;;  %s991_s4 = inlined_call_operand.vmem [shape: f32[2,1,128], index: 4, kind: input, shape index: {}]   ;;  %s992_s5 = inlined_call_operand.hbm [shape: bf16[384,128], index: 5, kind: input, shape index: {}]   ;;  %s993_s6 = inlined_call_operand.vmem [shape: f32[1,128], index: 6, kind: input, shape index: {}]   ;;  %s994_s7 = inlined_call_operand.vmem [shape: f32[16,128], index: 7, kind: output, shape index: {}]  }
   0x1   :  { %13 = vsyncpa [#allocation5], 0  ;;  %s35_s26 = sshll.u32 %s990_s3, 4  ;;  %s909_s27 = smov [#allocation4]   ;;  %s36_s26 = int_to_ptr.hbm [resolvable:$true] %s35_s26 }
   0x2   :  { %s37_s28 = sshll.u32 %s909_s27, 4  ;;  %s20_s8 = sshll.u32 %s988_s1, 4  ;;  %s38_s28 = int_to_ptr.vmem [resolvable:$true] %s37_s28  ;;  %s21_s8 = int_to_ptr.hbm [resolvable:$true] %s20_s8 }
   0x3   :  { %s910_s9 = smov 64   ;;  %s911_s10 = smov 4  }
   0x4   :  { %43 = dma.hbm_to_vmem [thread:$0]  %s36_s26, 2048, %s38_s28, [#allocation5], %s910_s9, %s910_s9, %s911_s10  }
   0x5   :  { %s912_s11 = smov [#allocation2]   ;;  %s50_s15 = sshll.u32 %s992_s5, 4  ;;  %s51_s15 = int_to_ptr.hbm [resolvable:$true] %s50_s15 }
   0x6   :  { %s22_s12 = sshll.u32 %s912_s11, 4  ;;  %s913_s3 = smov [#allocation6]   ;;  %s23_s12 = int_to_ptr.vmem [resolvable:$true] %s22_s12 }
   0x7   :  { %28 = dma.hbm_to_vmem [thread:$0]  %s21_s8, 1024, %s23_s12, [#allocation3], %s910_s9, %s910_s9, %s911_s10  }
   0x8   :  { %s52_s16 = sshll.u32 %s913_s3, 4  ;;  %s53_s16 = int_to_ptr.vmem [resolvable:$true] %s52_s16 }
   0x9   :  { %58 = dma.hbm_to_vmem [thread:$0]  %s51_s15, 3072, %s53_s16, [#allocation5], %s910_s9, %s910_s9, %s911_s10  }
   0xa   :  { %905 = dma.done.wait [#allocation3], 1024  }
   0xb   :  { %906 = vsyncadd [#allocation3], 4294966272 }
   0xc   :  { %907 = dma.done.wait [#allocation5], 5120  }
   0xd   :  { %908 = vsyncadd [#allocation5], 4294962176  ;;  %v783_v0 = vld [vmem:[#allocation2 + $0x38] sm:$0xff]  ;;  %v782_v1 = vld [vmem:[#allocation2 + $0x30] sm:$0xff] }
   0xe   :  { %144 = vmatpush.bf16.msra.mxu0 %v783_v0  ;;  %v799_v2 = vld [vmem:[#allocation4 + $0x38] sm:$0xff]  ;;  %v798_v4 = vld [vmem:[#allocation4 + $0x30] sm:$0xff]  ;;  %v781_v6 = vld [vmem:[#allocation2 + $0x28] sm:$0xff] }
   0xf   :  { %v791_v3 = vld [vmem:[#allocation6 + $0x38] sm:$0xff]  ;;  %245 = vmatpush.bf16.msra.mxu1 %v799_v2  ;;  %v790_v5 = vld [vmem:[#allocation6 + $0x30] sm:$0xff]  ;;  %v797_v7 = vld [vmem:[#allocation4 + $0x28] sm:$0xff] }
  0x10   :  { %388 = vmatpush.bf16.msra.mxu3 %v791_v3  ;;  %v789_v8 = vld [vmem:[#allocation6 + $0x28] sm:$0xff]  ;;  %v780_v9 = vld [vmem:[#allocation2 + $0x20] sm:$0xff]  ;;  %v779_v12 = vld [vmem:[#allocation2 + $0x18] sm:$0xff] }
  0x11   :  { %v796_v10 = vld [vmem:[#allocation4 + $0x20] sm:$0xff]  ;;  %v778_v13 = vld [vmem:[#allocation2 + $0x10] sm:$0xff]  ;;  %v777_v14 = vld [vmem:[#allocation2 + $0x8] sm:$0xff] }
  0x12   :  { %145 = vmatpush.bf16.msra.mxu0 %v782_v1  ;;  %v788_v11 = vld [vmem:[#allocation6 + $0x20] sm:$0xff]  ;;  %v74_v17 = vld [vmem:[%s987_s0 + $0x8] sm:$0xff]  ;;  %v795_v19 = vld [vmem:[#allocation4 + $0x18] sm:$0xff] }
  0x13   :  { %246 = vmatpush.bf16.msra.mxu1 %v798_v4  ;;  %v776_v15 = vld [vmem:[#allocation2] sm:$0xff]  ;;  %v787_v20 = vld [vmem:[#allocation6 + $0x18] sm:$0xff]  ;;  %v794_v21 = vld [vmem:[#allocation4 + $0x10] sm:$0xff] }
  0x14   :  { %389 = vmatpush.bf16.msra.mxu3 %v790_v5  ;;  %v73_v16 = vld [vmem:[%s987_s0] sm:$0xff]  ;;  %v786_v22 = vld [vmem:[#allocation6 + $0x10] sm:$0xff]  ;;  %v793_v23 = vld [vmem:[#allocation4 + $0x8] sm:$0xff] }
  0x15   :  { %v75_v18 = vpack.c.bf16 %v74_v17, %v73_v16  ;;  %v785_v24 = vld [vmem:[#allocation6 + $0x8] sm:$0xff]  ;;  %v792_v25 = vld [vmem:[#allocation4] sm:$0xff]  ;;  %v807_v27 = vld [vmem:[#allocation6 + $0x78] sm:$0xff] }
  0x16   :  { %146 = vmatpush.bf16.msra.mxu0 %v781_v6  ;;  %v784_v26 = vld [vmem:[#allocation6] sm:$0xff]  ;;  %v815_v28 = vld [vmem:[#allocation4 + $0x78] sm:$0xff]  ;;  %326 = vmatpush.bf16.msra.mxu2 %v807_v27  ;;  %v806_v29 = vld [vmem:[#allocation6 + $0x70] sm:$0xff] }
  0x17   :  { %247 = vmatpush.bf16.msra.mxu1 %v797_v7  ;;  %v814_v30 = vld [vmem:[#allocation4 + $0x70] sm:$0xff]  ;;  %v805_v31 = vld [vmem:[#allocation6 + $0x68] sm:$0xff]  ;;  %v804_v33 = vld [vmem:[#allocation6 + $0x60] sm:$0xff] }
  0x18   :  { %390 = vmatpush.bf16.msra.mxu3 %v789_v8  ;;  %v813_v32 = vld [vmem:[#allocation4 + $0x68] sm:$0xff]  ;;  %v812_v34 = vld [vmem:[#allocation4 + $0x60] sm:$0xff]  ;;  %v803_v43 = vld [vmem:[#allocation6 + $0x58] sm:$0xff] }
  0x19   :  { %v829_v36 = vld [vmem:[%s989_s2] ss:$0 sm:$0xff]  ;;  %v811_v44 = vld [vmem:[#allocation4 + $0x58] sm:$0xff]  ;;  %v802_v45 = vld [vmem:[#allocation6 + $0x50] sm:$0xff] }
  0x1a   :  { %147 = vmatpush.bf16.msra.mxu0 %v780_v9  ;;  %327 = vmatpush.bf16.msra.mxu2 %v806_v29  ;;  %v810_v46 = vld [vmem:[#allocation4 + $0x50] sm:$0xff]  ;;  %v801_v47 = vld [vmem:[#allocation6 + $0x48] sm:$0xff]  ;;  %v800_v49 = vld [vmem:[#allocation6 + $0x40] sm:$0xff] }
  0x1b   :  { %248 = vmatpush.bf16.msra.mxu1 %v796_v10  ;;  %v809_v48 = vld [vmem:[#allocation4 + $0x48] sm:$0xff]  ;;  %v808_v50 = vld [vmem:[#allocation4 + $0x40] sm:$0xff]  ;;  %v823_v51 = vld [vmem:[#allocation6 + $0xb8] sm:$0xff] }
  0x1c   :  { %391 = vmatpush.bf16.msra.mxu3 %v788_v11  ;;  %v822_v52 = vld [vmem:[#allocation6 + $0xb0] sm:$0xff]  ;;  %v821_v53 = vld [vmem:[#allocation6 + $0xa8] sm:$0xff]  ;;  %v820_v54 = vld [vmem:[#allocation6 + $0xa0] sm:$0xff] }
  0x1d   :  { %v830_v56 = vld [vmem:[%s991_s4] ss:$0 sm:$0xff]  ;;  %v819_v63 = vld [vmem:[#allocation6 + $0x98] sm:$0xff]  ;;  %v818_v0 = vld [vmem:[#allocation6 + $0x90] sm:$0xff] }
  0x1e   :  { %148 = vmatpush.bf16.msra.mxu0 %v779_v12  ;;  %328 = vmatpush.bf16.msra.mxu2 %v805_v31  ;;  %v817_v1 = vld [vmem:[#allocation6 + $0x88] sm:$0xff]  ;;  %v816_v2 = vld [vmem:[#allocation6 + $0x80] sm:$0xff] }
  0x1f   :  { %249 = vmatpush.bf16.msra.mxu1 %v795_v19  ;;  %v831_v4 = vld [vmem:[%s991_s4 + $0x1] ss:$0 sm:$0xff] }
  0x20   :  { %392 = vmatpush.bf16.msra.mxu3 %v787_v20 }
  0x22   :  { %149 = vmatpush.bf16.msra.mxu0 %v778_v13  ;;  %329 = vmatpush.bf16.msra.mxu2 %v804_v33 }
  0x23   :  { %250 = vmatpush.bf16.msra.mxu1 %v794_v21 }
  0x24   :  { %393 = vmatpush.bf16.msra.mxu3 %v786_v22 }
  0x26   :  { %150 = vmatpush.bf16.msra.mxu0 %v777_v14  ;;  %330 = vmatpush.bf16.msra.mxu2 %v803_v43  ;;  %v832_v14 = vld [vmem:[%s993_s6] ss:$0 sm:$0xff] }
  0x27   :  { %251 = vmatpush.bf16.msra.mxu1 %v793_v23 }
  0x28   :  { %394 = vmatpush.bf16.msra.mxu3 %v785_v24 }
  0x2a   :  { %151 = vmatpush.bf16.msra.mxu0 %v776_v15  ;;  %331 = vmatpush.bf16.msra.mxu2 %v802_v45 }
  0x2b   :  { %252 = vmatpush.bf16.msra.mxu1 %v792_v25 }
  0x2c   :  { %395 = vmatpush.bf16.msra.mxu3 %v784_v26 }
  0x2d   :  { %152 = vmatmul.bf16.vlgmr.msra.gmra.mxu0 %v75_v18 }
  0x2e   :  { %472 = vmatpush.bf16.msrb.mxu0 %v815_v28  ;;  %332 = vmatpush.bf16.msra.mxu2 %v801_v47 }
  0x2f   :  { %553 = vmatpush.bf16.msrb.mxu1 %v823_v51 }
  0x32   :  { %473 = vmatpush.bf16.msrb.mxu0 %v814_v30  ;;  %333 = vmatpush.bf16.msra.mxu2 %v800_v49 }
  0x33   :  { %554 = vmatpush.bf16.msrb.mxu1 %v822_v52 }
  0x36   :  { %474 = vmatpush.bf16.msrb.mxu0 %v813_v32 }
  0x37   :  { %555 = vmatpush.bf16.msrb.mxu1 %v821_v53 }
  0x3a   :  { %475 = vmatpush.bf16.msrb.mxu0 %v812_v34 }
  0x3b   :  { %556 = vmatpush.bf16.msrb.mxu1 %v820_v54 }
  0x3e   :  { %476 = vmatpush.bf16.msrb.mxu0 %v811_v44 }
  0x3f   :  { %557 = vmatpush.bf16.msrb.mxu1 %v819_v63 }
  0x42   :  { %477 = vmatpush.bf16.msrb.mxu0 %v810_v46 }
  0x43   :  { %558 = vmatpush.bf16.msrb.mxu1 %v818_v0 }
  0x46   :  { %478 = vmatpush.bf16.msrb.mxu0 %v809_v48 }
  0x47   :  { %559 = vmatpush.bf16.msrb.mxu1 %v817_v1 }
  0x4a   :  { %479 = vmatpush.bf16.msrb.mxu0 %v808_v50 }
  0x4b   :  { %560 = vmatpush.bf16.msrb.mxu1 %v816_v2 }
  0xaa   :  { %v153_v35 = vpop.f32.mrf.mxu0 }
  0xab   :  { %v154_v37 = vadd.f32 %v829_v36, %v153_v35 }
  0xad   :  { %v158_v40 = vmax.f32 %v154_v37, 0.0 }
  0xb2   :  { %v155_v38 = vpop.f32.mrf.mxu0 }
  0xb3   :  { %v156_v39 = vadd.f32 %v829_v36, %v155_v38 }
  0xb5   :  { %v159_v41 = vmax.f32 %v156_v39, 0.0 }
  0xb7   :  { %v160_v42 = vpack.c.bf16 %v159_v41, %v158_v40 }
  0xb9   :  { %253 = vmatmul.bf16.vlgmr.msra.gmra.mxu1 %v160_v42  ;;  %396 = vmatmul.bf16.vlgmr.msra.gmra.mxu3 %v160_v42 }
 0x136   :  { %v254_v55 = vpop.f32.mrf.mxu1 }
 0x137   :  { %v255_v57 = vadd.f32 %v830_v56, %v254_v55 }
 0x139   :  { %v259_v60 = vmax.f32 %v255_v57, 0.0 }
 0x13c   :  { %v397_v12 = vpop.f32.mrf.mxu3 }
 0x13e   :  { %v256_v58 = vpop.f32.mrf.mxu1 }
 0x13f   :  { %v257_v59 = vadd.f32 %v830_v56, %v256_v58 }
 0x141   :  { %v260_v61 = vmax.f32 %v257_v59, 0.0 }
 0x143   :  { %v261_v62 = vpack.c.bf16 %v260_v61, %v259_v60 }
 0x144   :  { %v399_v19 = vpop.f32.mrf.mxu3 }
 0x145   :  { %334 = vmatmul.bf16.vlgmr.msra.gmra.mxu2 %v261_v62  ;;  %480 = vmatmul.bf16.vlgmr.msrb.gmra.mxu0 %v261_v62 }
 0x1c2   :  { %v481_v3 = vpop.f32.mrf.mxu0 }
 0x1c3   :  { %v482_v5 = vadd.f32 %v831_v4, %v481_v3 }
 0x1c5   :  { %v486_v8 = vmax.f32 %v482_v5, 0.0 }
 0x1c8   :  { %v335_v11 = vpop.f32.mrf.mxu2 }
 0x1c9   :  { %v398_v13 = vadd.f32 %v397_v12, %v335_v11 }
 0x1ca   :  { %v483_v6 = vpop.f32.mrf.mxu0 }
 0x1cb   :  { %v484_v7 = vadd.f32 %v831_v4, %v483_v6 }
 0x1cd   :  { %v487_v9 = vmax.f32 %v484_v7, 0.0 }
 0x1cf   :  { %v488_v10 = vpack.c.bf16 %v487_v9, %v486_v8 }
 0x1d0   :  { %v337_v18 = vpop.f32.mrf.mxu2 }
 0x1d1   :  { %561 = vmatmul.bf16.vlgmr.msrb.gmra.mxu1 %v488_v10  ;;  %v400_v20 = vadd.f32 %v399_v19, %v337_v18 }
 0x24e   :  { %v562_v15 = vpop.f32.mrf.mxu1 }
 0x24f   :  { %v567_v16 = vadd.f32 %v562_v15, %v398_v13 }
 0x251   :  { %v573_v17 = vadd.f32 %v832_v14, %v567_v16 }
 0x253   :  { %575 = vst [vmem:[%s994_s7] sm:$0xff] %v573_v17 }
 0x256   :  { %v564_v21 = vpop.f32.mrf.mxu1 }
 0x257   :  { %v568_v22 = vadd.f32 %v564_v21, %v400_v20 }
 0x259   :  { %v574_v23 = vadd.f32 %v832_v14, %v568_v22 }
 0x25b   :  { %576 = vst [vmem:[%s994_s7 + $0x8] sm:$0xff] %v574_v23 }
 0x25c   :  { %581 = vsyncpa [#allocation3], 1 }
 0x25d   :  { %582 = vsyncpa [#allocation5], 1 }

</bundles_post_ra>
